<compile_context>
chip_gen: v7x
topology: tpu7x:2x2x1
jax: 0.10.0
libtpu: 0.0.40
codegen_flags: <defaults>
</compile_context>

<pallas_src>
import jax
import jax.numpy as jnp
from jax.experimental import pallas as pl
from jax.experimental.pallas import tpu as pltpu


def _pos_embed_kernel(pos_ref, x_ref, out_ref):
    # pos_ref : VMEM (TILE_N, 1)   x.dtype  -- precomputed positional column
    # x_ref   : VMEM (TILE_N, D)   x.dtype
    # out_ref : VMEM (TILE_N, D+1) x.dtype
    # Single concatenate -> single full-tile store: every output vreg written
    # once (the unaligned 1-lane shift of x happens in registers via XLU).
    out_ref[...] = jnp.concatenate([pos_ref[...], x_ref[...]], axis=1).astype(
        out_ref.dtype
    )


def _lane_pad(d):
    return ((d + 127) // 128) * 128


def positional_embedding_layer(
    x, lengths, *, tile_n=None, vmem_budget_bytes=24 * 1024 * 1024
):
    """x: (N, D) array with N == sum(lengths); lengths: STATIC Python ints."""
    N, D = x.shape
    lengths_list = [int(l) for l in lengths]  # must be static (host-side metadata)
    assert sum(lengths_list) == N, "sum(lengths) must equal x.shape[0]"

    # ---- O(N) wrapper glue: one (N, 1) pos stream in the output dtype -------
    lengths_arr = jnp.asarray(lengths_list, jnp.int32)
    starts = jnp.concatenate(
        [jnp.zeros((1,), jnp.int32), jnp.cumsum(lengths_arr)[:-1].astype(jnp.int32)]
    )
    seg_start = jnp.repeat(starts, lengths_arr, total_repeat_length=N)
    seg_len = jnp.repeat(lengths_arr, lengths_arr, total_repeat_length=N)
    row = jnp.arange(N, dtype=jnp.int32)
    # True division (not reciprocal*mul): matches torch's arange(1, L+1)/L.
    pos = (
        (row - seg_start + 1).astype(jnp.float32) / seg_len.astype(jnp.float32)
    ).astype(x.dtype).reshape(N, 1)

    # ---- Tile sizing: byte budget, generation-safe (v5e/v6e/v7x) ------------
    itemsize = jnp.dtype(x.dtype).itemsize
    sub = max(8, 32 // max(itemsize, 1))  # 8 for f32, 16 for bf16, 32 for 8-bit
    if tile_n is None:
        # VMEM bytes per row across all blocks (lane-padded), double-buffered.
        per_row = itemsize * (_lane_pad(D) + _lane_pad(D + 1) + 128)
        tile_n = max(sub, (vmem_budget_bytes // (2 * per_row)) // sub * sub)
    else:
        tile_n = max(sub, (int(tile_n) + sub - 1) // sub * sub)
    n_pad = (N + sub - 1) // sub * sub
    tile_n = min(tile_n, n_pad)

    grid = (pl.cdiv(N, tile_n),)

    out = pl.pallas_call(
        _pos_embed_kernel,
        out_shape=jax.ShapeDtypeStruct((N, D + 1), x.dtype),
        grid=grid,
        in_specs=[
            pl.BlockSpec((tile_n, 1), lambda i: (i, 0)),      # pos
            pl.BlockSpec((tile_n, D), lambda i: (i, 0)),      # x
        ],
        out_specs=pl.BlockSpec((tile_n, D + 1), lambda i: (i, 0)),
        compiler_params=pltpu.CompilerParams(
            dimension_semantics=("parallel",),                # megacore on v7x
            vmem_limit_bytes=32 * 1024 * 1024,                # budget + headroom
        ),
    )(pos, x)
    return out


def _reference(x, lengths):
    """Pure-JAX reference mirroring the PyTorch forward."""
    pe = jnp.concatenate(
        [
            jnp.arange(1, int(L) + 1, dtype=jnp.float32) / jnp.float32(L)
            for L in lengths
        ]
    )
    return jnp.concatenate([pe[:, None].astype(x.dtype), x], axis=1)


if __name__ == "__main__":
    key = jax.random.PRNGKey(0)
    D = 16

    # Small deterministic example matching the module's forward (single tile).
    lengths = [3, 5]
    N = sum(lengths)
    x = jax.random.normal(key, (N, D), dtype=jnp.float32)
    phi = jax.block_until_ready(positional_embedding_layer(x, lengths))
    ref = _reference(x, lengths)
    assert phi.shape == (N, D + 1), phi.shape
    assert jnp.allclose(phi, ref, atol=1e-6), "mismatch vs reference (single tile)"

    # Tiled / pipelined path: several segments (incl. a zero-length one),
    # multiple grid steps, non-divisible last tile.
    lengths2 = [5, 11, 0, 4]  # N = 20, tile_n = 8 -> 3 grid steps (last partial)
    N2 = sum(lengths2)
    x2 = jax.random.normal(jax.random.PRNGKey(1), (N2, D), dtype=jnp.float32)
    phi2 = jax.block_until_ready(positional_embedding_layer(x2, lengths2, tile_n=8))
    assert jnp.allclose(phi2, _reference(x2, lengths2), atol=1e-6), \
        "mismatch vs reference (multi tile)"

    print("KERNEL_OK")
</pallas_src>

<mosaic_0001>
module attributes {stable_mosaic.version = 11 : i64} {
  func.func @_pos_embed_kernel(%arg0: i32, %arg1: memref<8x1xf32, #tpu.memory_space<vmem>>, %arg2: memref<8x16xf32, #tpu.memory_space<vmem>>, %arg3: memref<8x17xf32, #tpu.memory_space<vmem>>) attributes {dimension_semantics = [#tpu.dimension_semantics<parallel>], iteration_bounds = array<i64: 1>, scalar_prefetch = 0 : i64, scratch_operands = 0 : i64, tpu.core_type = #tpu.core_type<tc>, window_params = [{transform_indices = @transform_0, window_bounds = array<i64: 8, 1>}, {transform_indices = @transform_1, window_bounds = array<i64: 8, 16>}, {transform_indices = @transform_2, window_bounds = array<i64: 8, 17>}]} {
    %c0 = arith.constant 0 : index
    %c0_0 = arith.constant 0 : index
    %0 = vector.load %arg1[%c0, %c0_0] : memref<8x1xf32, #tpu.memory_space<vmem>>, vector<8x1xf32>
    %c0_1 = arith.constant 0 : index
    %c0_2 = arith.constant 0 : index
    %1 = vector.load %arg2[%c0_1, %c0_2] : memref<8x16xf32, #tpu.memory_space<vmem>>, vector<8x16xf32>
    %2 = tpu.concatenate %0, %1 in 1 : vector<8x1xf32>, vector<8x16xf32> -> vector<8x17xf32>
    %c0_3 = arith.constant 0 : index
    %c0_4 = arith.constant 0 : index
    %3 = vector.load %arg3[%c0_3, %c0_4] : memref<8x17xf32, #tpu.memory_space<vmem>>, vector<8x17xf32>
    tpu.vector_store %arg3[%c0_3, %c0_4], %2 {strides = array<i32>} : memref<8x17xf32, #tpu.memory_space<vmem>>, vector<8x17xf32>,
    return
  }
  func.func @transform_0(%arg0: i32) -> (i32, i32) {
    %c0_i32 = arith.constant 0 : i32
    %c0_i32_0 = arith.constant 0 : i32
    return %arg0, %c0_i32 : i32, i32
  }
  func.func @transform_1(%arg0: i32) -> (i32, i32) {
    %c0_i32 = arith.constant 0 : i32
    %c0_i32_0 = arith.constant 0 : i32
    return %arg0, %c0_i32 : i32, i32
  }
  func.func @transform_2(%arg0: i32) -> (i32, i32) {
    %c0_i32 = arith.constant 0 : i32
    %c0_i32_0 = arith.constant 0 : i32
    return %arg0, %c0_i32 : i32, i32
  }
}

</mosaic_0001>

<bundles_post_ra>
// kernel: tpu_custom_call.1
= control target key start
LH: loop header
LB: loop body
LE: loop exit
PB: predicated region body
PF: predicated region fallthrough
CT: control target
= control target key end

     0   :  { %s97_s0 = inlined_call_operand.vmem [shape: f32[8,1], index: 0, kind: input, shape index: {}]   ;;  %s98_s1 = inlined_call_operand.vmem [shape: f32[8,16], index: 1, kind: input, shape index: {}]   ;;  %s99_s2 = inlined_call_operand.hbm [shape: f32[8,17], index: 2, kind: output, shape index: {}]  }
   0x1   :  { %v13_v0 = vld [vmem:[%s98_s1] sm:$0xff] }
   0x2   :  { %7 = vsyncpa [#allocation3], 0  ;;  %s62_s11 = smov 1   ;;  %s63_s12 = smov [#allocation2]   ;;  %v12_v1 = vld [vmem:[%s97_s0] sm:$0xff]  ;;  %vm18_vm0 = vcmask 7168  }
   0x3   :  { %15 = vrot.lane.b32.xlu0 %v13_v0, %s62_s11  ;;  %s28_s13 = sshll.u32 %s63_s12, 4  ;;  %vm20_vm1 = vcmask 138240   ;;  %s29_s13 = int_to_ptr.vmem [resolvable:$true] %s28_s13 }
   0x4   :  { %s38_s16 = scalar_lea.vmem %s29_s13, 128  ;;  %p43_p1 = scmp.lt.s32.totalorder %s29_s13, %s29_s13 }
   0x5   :  { %p39_p0 = scmp.ne.s32.totalorder %s29_s13, %s38_s16  ;;  %p44_p2 = scmp.lt.s32.totalorder %s38_s16, %s38_s16 }
   0x7   :  { %p45_p3 = por %p44_p2, %p43_p1 }
   0x9   :  { %p46_p4 = pnand %p45_p3, %p39_p0 }
  0x75   :  { %v16_v2 = vpop.permute.xlu0 %15 }
  0x76   :  { %v19_v3 = vsel %vm18_vm0, %v12_v1, %v16_v2 }
  0x77   :  { %21 = vst.msk [vmem:[#allocation2] sm:$0xff] %vm20_vm1, %v19_v3 }
  0x78   :  { %49 = shalt.err (!%p46_p4)
}
  0x79   :  { %s50_s18 = scalar_lea.hbm %s99_s2, 128 }
  0x7a   :  { %p51_p5 = scmp.ne.s32.totalorder %s99_s2, %s50_s18  ;;  %p54_p6 = scmp.lt.u32.totalorder %s50_s18, %s99_s2 }
  0x7c   :  { %p56_p7 = pnand %p54_p6, %p51_p5 }
  0x7e   :  { %59 = shalt.err (!%p56_p7)
}
  0x7f   :  { %31 = dma.vmem_to_hbm [thread:$0]  %s29_s13, 128, %s99_s2, [#allocation3]  }
  0x80   :  { %60 = dma.done.wait [#allocation3], 128  }
  0x81   :  { %61 = vsyncadd [#allocation3], 4294967168 }
  0x82   :  { %35 = vsyncpa [#allocation3], 1 }

</bundles_post_ra>
